<compile_context>
chip_gen: v6e
topology: v6e:2x2x1
jax: 0.10.0
libtpu: 0.0.40
codegen_flags: <defaults>
</compile_context>

<pallas_src>
import functools
import math

import jax
import jax.numpy as jnp
from jax import lax
from jax.experimental import pallas as pl
from jax.experimental.pallas import tpu as pltpu


def _round_up(x: int, m: int) -> int:
    return (x + m - 1) // m * m


def _cdiv(a: int, b: int) -> int:
    return (a + b - 1) // b


def _memory_local_kernel(q_ref, mem_ref, feat_ref, loss_ref, *, tile_n, n_rows):
    i = pl.program_id(0)

    q = q_ref[...]            # (tile_n, C), caller dtype
    mem = mem_ref[...]        # (num_slots, C), caller dtype

    # Promote matmul operands to a common dtype (f32 in the demo; bf16 inputs
    # stream at half the HBM bytes and hit the MXU at bf16 rate).
    mm_dtype = jnp.promote_types(q.dtype, mem.dtype)
    q_mm = q.astype(mm_dtype)
    mem_mm = mem.astype(mm_dtype)

    # dist = Q @ mem^T via a transposed-RHS dot_general (contract over C);
    # the grid-constant slot matrix is never transposed/copied per tile.
    dist = lax.dot_general(
        q_mm, mem_mm,
        dimension_numbers=(((1,), (1,)), ((), ())),
        preferred_element_type=jnp.float32)              # (tile_n, num_slots)

    # Numerically stable softmax statistics over the (unpadded) slot axis.
    dist_max = jnp.max(dist, axis=1, keepdims=True)       # (tile_n, 1)
    e = jnp.exp(dist - dist_max)                          # (tile_n, num_slots)
    z = jnp.sum(e, axis=1, keepdims=True)                 # (tile_n, 1)
    # EUP approx reciprocal + one Newton step: full f32 accuracy, no VPU divide.
    inv_z = pl.reciprocal(z, approx=True)
    inv_z = inv_z * (jnp.float32(2.0) - z * inv_z)

    # select = softmax(dist) @ mem, with the 1/Z normalization folded into the
    # (tile_n, C) result instead of materializing p = e * inv_z.
    select = jnp.dot(e.astype(mem_mm.dtype), mem_mm,
                     preferred_element_type=jnp.float32)  # (tile_n, C) f32
    select = select * inv_z
    feat_ref[...] = select.astype(feat_ref.dtype)

    # Entropy via the log-sum-exp identity (exact; the PyTorch reference uses
    # log(p + 1e-12), which differs only at ~1e-12 level):
    #   -sum_j p_j log p_j = max + log(Z) - (1/Z) * sum_j e_j * d_j
    ent = dist_max + jnp.log(z) - inv_z * jnp.sum(e * dist, axis=1, keepdims=True)

    # Per-row squared error against the f32 query.
    diff = q.astype(jnp.float32) - select
    sq = jnp.sum(diff * diff, axis=1, keepdims=True)       # (tile_n, 1)

    # Rows of a partial last tile have unspecified contents -> keep them out
    # of the loss sums (their feat writes are masked by Pallas at writeback).
    if n_rows % tile_n != 0:
        row_ids = i * tile_n + lax.broadcasted_iota(jnp.int32, (tile_n, 1), 0)
        valid = row_ids < n_rows
        ent = jnp.where(valid, ent, jnp.float32(0.0))
        sq = jnp.where(valid, sq, jnp.float32(0.0))

    ent_sum = jnp.sum(ent)
    sq_sum = jnp.sum(sq)

    # Per-tile unnormalized partial sums as a lane-dense (1, 2, 128) block:
    # sublane 0 = entropy sum, sublane 1 = squared-error sum.  The wrapper
    # reduces across tiles and normalizes once, so the grid axis stays purely
    # "parallel" (v7x dual-TensorCore sharding).
    row_sel = lax.broadcasted_iota(jnp.int32, (1, 2, 128), 1) == 0
    loss_ref[...] = jnp.where(row_sel, ent_sum, sq_sum)


def memory_local_forward(x, mem_matrix, *, tile_n_max=1024, interpret=False):
    """x: [b, t, c]; mem_matrix: [num_slots, c].

    Returns (feat [b, t, c], loss scalar) matching the PyTorch MemoryLocal.
    """
    b, t, c = x.shape
    num_slots, slot_dim = mem_matrix.shape
    assert slot_dim == c, "slot_dim must equal the query feature dim"
    n = b * t

    # Free reshape only -- no padded HBM copies of q / mem / feat.
    query = x.reshape(n, c)

    # ---- generation-aware VMEM budgeting --------------------------------
    try:
        info = pltpu.get_tpu_info()
        vmem_cap = int(getattr(info, "vmem_capacity_bytes", 64 * 1024 * 1024))
    except Exception:
        vmem_cap = 64 * 1024 * 1024                      # conservative (v7x per-TC)
    # ~48 MiB on v7x (64 MiB physical), ~96 MiB on v5e/v6e (128 MiB physical).
    vmem_limit = min((vmem_cap * 3) // 4, 96 * 1024 * 1024)

    stream_item = jnp.dtype(x.dtype).itemsize
    mem_bytes = num_slots * c * jnp.dtype(mem_matrix.dtype).itemsize
    # Per-row VMEM: double-buffered q tile + double-buffered feat tile + f32
    # intermediates (dist, e, e*dist over num_slots; qf, select, diff over c).
    per_row = 4 * c * stream_item + 4 * (3 * num_slots + 3 * c)
    headroom = 4 * 1024 * 1024
    # The grid-resident slot matrix is still double-buffered by the pipeline.
    row_budget = vmem_limit - 2 * mem_bytes - headroom
    if row_budget > 8 * per_row:
        tile_cap = max(8, (row_budget // per_row) // 8 * 8)
    else:
        tile_cap = 8

    # Keep >= 2 grid tiles whenever n allows, so both v7x TensorCores get work.
    half_n = _round_up(max(_cdiv(n, 2), 1), 8)
    tile_n = max(8, min(tile_n_max, tile_cap, half_n))
    num_tiles = _cdiv(n, tile_n)

    kernel = functools.partial(_memory_local_kernel, tile_n=tile_n, n_rows=n)

    feat2d, partials = pl.pallas_call(
        kernel,
        grid=(num_tiles,),
        in_specs=[
            pl.BlockSpec((tile_n, c), lambda i: (i, 0)),        # streamed Q tiles
            pl.BlockSpec((num_slots, c), lambda i: (0, 0)),     # resident slot matrix
        ],
        out_specs=(
            pl.BlockSpec((tile_n, c), lambda i: (i, 0)),        # streamed feat tiles
            pl.BlockSpec((1, 2, 128), lambda i: (i, 0, 0)),     # per-tile loss partials
        ),
        out_shape=(
            jax.ShapeDtypeStruct((n, c), x.dtype),
            jax.ShapeDtypeStruct((num_tiles, 2, 128), jnp.float32),
        ),
        compiler_params=pltpu.CompilerParams(
            dimension_semantics=("parallel",),   # shard row tiles across TCs
            vmem_limit_bytes=int(vmem_limit),
        ),
        interpret=interpret,
    )(query, mem_matrix)

    feat = feat2d.reshape(b, t, c)

    # Final reduction + normalization (once, outside the hot loop).
    ent_total = jnp.sum(partials[:, 0, 0])
    sq_total = jnp.sum(partials[:, 1, 0])
    loss = ent_total / jnp.float32(n) + sq_total / jnp.float32(n * c)
    return feat, loss


def _reference(x, mem_matrix):
    """Pure-JAX reference mirroring the PyTorch forward (sanity check)."""
    b, t, c = x.shape
    q = x.reshape(b * t, c)
    dist = q @ mem_matrix.T
    p = jax.nn.softmax(dist, axis=1)
    sel = p @ mem_matrix
    s_loss = jnp.mean(jnp.sum(-p * jnp.log(p + 1e-12), axis=1))
    p_loss = jnp.mean((q - sel) ** 2)
    return sel.reshape(b, t, c), s_loss + p_loss


if __name__ == "__main__":
    # Module hyper-parameters (synthetic, deterministic init).
    num_slots = 8
    slot_dim = 32       # == c
    b, t = 2, 8

    key = jax.random.PRNGKey(0)
    k_mem, k_x = jax.random.split(key)

    # reset_parameters(): uniform(-stdv, stdv), stdv = 1/sqrt(slot_dim)
    stdv = 1.0 / math.sqrt(slot_dim)
    mem_matrix = jax.random.uniform(
        k_mem, (num_slots, slot_dim), dtype=jnp.float32,
        minval=-stdv, maxval=stdv)

    x = jax.random.normal(k_x, (b, t, slot_dim), dtype=jnp.float32)

    feat, loss = memory_local_forward(x, mem_matrix)
    feat = jax.block_until_ready(feat)
    loss = jax.block_until_ready(loss)

    # Sanity-check against a pure-JAX reference of the PyTorch math.
    feat_ref, loss_ref = _reference(x, mem_matrix)
    assert jnp.allclose(feat, feat_ref, atol=1e-5, rtol=1e-5), "feat mismatch"
    assert jnp.allclose(loss, loss_ref, atol=1e-5, rtol=1e-5), "loss mismatch"

    print("KERNEL_OK")
</pallas_src>

<mosaic_0001>
module attributes {stable_mosaic.version = 11 : i64} {
  func.func @_memory_local_kernel(%arg0: i32, %arg1: memref<8x32xf32, #tpu.memory_space<vmem>>, %arg2: memref<8x32xf32, #tpu.memory_space<vmem>>, %arg3: memref<8x32xf32, #tpu.memory_space<vmem>>, %arg4: memref<1x2x128xf32, #tpu.memory_space<vmem>>) attributes {dimension_semantics = [#tpu.dimension_semantics<parallel>], iteration_bounds = array<i64: 2>, scalar_prefetch = 0 : i64, scratch_operands = 0 : i64, tpu.core_type = #tpu.core_type<tc>, window_params = [{transform_indices = @transform_0, window_bounds = array<i64: 8, 32>}, {pipeline_mode = #tpu.pipeline_mode<synchronous>, transform_indices = @transform_1, window_bounds = array<i64: 8, 32>}, {transform_indices = @transform_2, window_bounds = array<i64: 8, 32>}, {transform_indices = @transform_3, window_bounds = array<i64: 1, 2, 128>}]} {
    %c0 = arith.constant 0 : index
    %c0_0 = arith.constant 0 : index
    %0 = vector.load %arg1[%c0, %c0_0] : memref<8x32xf32, #tpu.memory_space<vmem>>, vector<8x32xf32>
    %c0_1 = arith.constant 0 : index
    %c0_2 = arith.constant 0 : index
    %1 = vector.load %arg2[%c0_1, %c0_2] : memref<8x32xf32, #tpu.memory_space<vmem>>, vector<8x32xf32>
    %cst = arith.constant dense<0.000000e+00> : vector<8x8xf32>
    %2 = tpu.matmul %0, %1, %cst {dimension_numbers = #tpu.dot_dimension_numbers<[1], [1], [0], [0], [0, 0, 1, 0], [], []>} : vector<8x32xf32>, vector<8x32xf32>, vector<8x8xf32> -> vector<8x8xf32>
    %cst_3 = arith.constant dense<0xFF800000> : vector<8xf32>
    %3 = vector.multi_reduction <maximumf>, %2, %cst_3 [1] : vector<8x8xf32> to vector<8xf32>
    %4 = vector.shape_cast %3 : vector<8xf32> to vector<8x1xf32>
    %5 = vector.broadcast %4 : vector<8x1xf32> to vector<8x8xf32>
    %6 = arith.subf %2, %5 : vector<8x8xf32>
    %7 = math.exp %6 : vector<8x8xf32>
    %cst_4 = arith.constant dense<0.000000e+00> : vector<8xf32>
    %8 = vector.multi_reduction <add>, %7, %cst_4 [1] : vector<8x8xf32> to vector<8xf32>
    %9 = vector.shape_cast %8 : vector<8xf32> to vector<8x1xf32>
    %10 = tpu.reciprocal %9 {approx = true} : vector<8x1xf32> -> vector<8x1xf32>
    %11 = arith.mulf %9, %10 : vector<8x1xf32>
    %cst_5 = arith.constant 2.000000e+00 : f32
    %12 = vector.broadcast %cst_5 : f32 to vector<8x1xf32>
    %13 = arith.subf %12, %11 : vector<8x1xf32>
    %14 = arith.mulf %10, %13 : vector<8x1xf32>
    %cst_6 = arith.constant dense<0.000000e+00> : vector<8x32xf32>
    %15 = tpu.matmul %7, %1, %cst_6 {dimension_numbers = #tpu.dot_dimension_numbers<[1], [0], [0], [1], [0, 0, 1, 1], [], []>} : vector<8x8xf32>, vector<8x32xf32>, vector<8x32xf32> -> vector<8x32xf32>
    %16 = vector.broadcast %14 : vector<8x1xf32> to vector<8x32xf32>
    %17 = arith.mulf %15, %16 : vector<8x32xf32>
    %c0_7 = arith.constant 0 : index
    %c0_8 = arith.constant 0 : index
    %18 = vector.load %arg3[%c0_7, %c0_8] : memref<8x32xf32, #tpu.memory_space<vmem>>, vector<8x32xf32>
    tpu.vector_store %arg3[%c0_7, %c0_8], %17 {strides = array<i32>} : memref<8x32xf32, #tpu.memory_space<vmem>>, vector<8x32xf32>,
    %19 = math.log %9 : vector<8x1xf32>
    %20 = arith.addf %4, %19 : vector<8x1xf32>
    %21 = arith.mulf %7, %2 : vector<8x8xf32>
    %cst_9 = arith.constant dense<0.000000e+00> : vector<8xf32>
    %22 = vector.multi_reduction <add>, %21, %cst_9 [1] : vector<8x8xf32> to vector<8xf32>
    %23 = vector.shape_cast %22 : vector<8xf32> to vector<8x1xf32>
    %24 = arith.mulf %14, %23 : vector<8x1xf32>
    %25 = arith.subf %20, %24 : vector<8x1xf32>
    %26 = arith.subf %0, %17 : vector<8x32xf32>
    %27 = arith.mulf %26, %26 : vector<8x32xf32>
    %cst_10 = arith.constant dense<0.000000e+00> : vector<8xf32>
    %28 = vector.multi_reduction <add>, %27, %cst_10 [1] : vector<8x32xf32> to vector<8xf32>
    %29 = vector.shape_cast %28 : vector<8xf32> to vector<8x1xf32>
    %30 = vector.shape_cast %25 : vector<8x1xf32> to vector<1x8x1xf32>
    %cst_11 = arith.constant dense<0.000000e+00> : vector<1xf32>
    %31 = vector.multi_reduction <add>, %30, %cst_11 [1, 2] : vector<1x8x1xf32> to vector<1xf32>
    %32 = vector.shape_cast %31 : vector<1xf32> to vector<1x1x1xf32>
    %33 = vector.extract %32[0, 0, 0] : f32 from vector<1x1x1xf32>
    %34 = vector.shape_cast %29 : vector<8x1xf32> to vector<1x8x1xf32>
    %cst_12 = arith.constant dense<0.000000e+00> : vector<1xf32>
    %35 = vector.multi_reduction <add>, %34, %cst_12 [1, 2] : vector<1x8x1xf32> to vector<1xf32>
    %36 = vector.shape_cast %35 : vector<1xf32> to vector<1x1x1xf32>
    %37 = vector.extract %36[0, 0, 0] : f32 from vector<1x1x1xf32>
    %38 = tpu.iota {dimensions = array<i32: 1>} : vector<1x2x128xi32>
    %c0_i32 = arith.constant 0 : i32
    %39 = vector.broadcast %c0_i32 : i32 to vector<1x2x128xi32>
    %40 = arith.cmpi eq, %38, %39 : vector<1x2x128xi32>
    %41 = vector.broadcast %33 : f32 to vector<1x2x128xf32>
    %42 = vector.broadcast %37 : f32 to vector<1x2x128xf32>
    %43 = arith.select %40, %41, %42 : vector<1x2x128xi1>, vector<1x2x128xf32>
    %c0_13 = arith.constant 0 : index
    %c0_14 = arith.constant 0 : index
    %c0_15 = arith.constant 0 : index
    %44 = vector.load %arg4[%c0_13, %c0_14, %c0_15] : memref<1x2x128xf32, #tpu.memory_space<vmem>>, vector<1x2x128xf32>
    tpu.vector_store %arg4[%c0_13, %c0_14, %c0_15], %43 {strides = array<i32>} : memref<1x2x128xf32, #tpu.memory_space<vmem>>, vector<1x2x128xf32>,
    return
  }
  func.func @transform_0(%arg0: i32) -> (i32, i32) {
    %c0_i32 = arith.constant 0 : i32
    %c0_i32_0 = arith.constant 0 : i32
    return %arg0, %c0_i32 : i32, i32
  }
  func.func @transform_1(%arg0: i32) -> (i32, i32) {
    %c0_i32 = arith.constant 0 : i32
    %c0_i32_0 = arith.constant 0 : i32
    %c0_i32_1 = arith.constant 0 : i32
    return %c0_i32, %c0_i32_0 : i32, i32
  }
  func.func @transform_2(%arg0: i32) -> (i32, i32) {
    %c0_i32 = arith.constant 0 : i32
    %c0_i32_0 = arith.constant 0 : i32
    return %arg0, %c0_i32 : i32, i32
  }
  func.func @transform_3(%arg0: i32) -> (i32, i32, i32) {
    %c0_i32 = arith.constant 0 : i32
    %c0_i32_0 = arith.constant 0 : i32
    %c0_i32_1 = arith.constant 0 : i32
    return %arg0, %c0_i32, %c0_i32_0 : i32, i32, i32
  }
}

</mosaic_0001>

<bundles_post_ra>
// kernel: tpu_custom_call.1
= control target key start
LH: loop header
LB: loop body
LE: loop exit
PB: predicated region body
PF: predicated region fallthrough
CT: control target
= control target key end

     0   :  { %9 = vsyncpa [#allocation3], 0  ;;  %s1052_s0 = inlined_call_operand.hbm [shape: f32[16,32], index: 0, kind: input, shape index: {}]   ;;  %s1053_s1 = inlined_call_operand.hbm [shape: f32[8,32], index: 1, kind: input, shape index: {}]   ;;  %s1054_s2 = inlined_call_operand.hbm [shape: f32[16,32], index: 2, kind: output, shape index: {0}]   ;;  %s1055_s3 = inlined_call_operand.hbm [shape: f32[2,2,128], index: 3, kind: output, shape index: {1}]  }
   0x1   :  { %11 = vsyncpa [#allocation3 + $0x1], 0 }
   0x2   :  { %12 = vsyncpa [#allocation6], 0 }
   0x3   :  { %13 = vsyncpa [#allocation4], 0 }
   0x4   :  { %15 = vsyncpa [#allocation4 + $0x1], 0 }
   0x5   :  { %16 = vsyncpa [#allocation9], 0 }
   0x6   :  { %18 = vsyncpa [#allocation9 + $0x1], 0  ;;  %s852_s12 = smov 0   ;;  %s854_s13 = smov 0  }
   0x7   :  { %s856_s14 = smov 0   ;;  %s858_s15 = smov 0  }
   0x8 LB: > { %s873_s16 = sadd.s32 4294967295, %s824_s15   ;;  %s564_s17 = sadd.s32 4294967294, %s824_s15   ;;  %s824_s15 = sphi %s858_s15, %s1078_s15   ;;  %s820_s14 = sphi %s856_s14, %s1077_s14   ;;  %s816_s13 = sphi %s854_s13, %s1076_s13   ;;  %s812_s12 = sphi %s852_s12, %s1075_s12  }
   0x9   : > { %p44_p0 = scmp.ne.s32.totalorder %s816_s13, %s812_s12  ;;  %p1056_p1 = scmp.eq.s32.totalorder %s873_s16, 0 }
   0xa   : > { %p95_p3 = scmp.eq.s32.totalorder %s564_s17, 1  ;;  %p565_p5 = scmp.ge.s32.totalorder %s824_s15, 1 }
   0xb   : > { %p882_p4 = por %p1056_p1, %p44_p0  ;;  %p128_p7 = scmp.lt.s32.totalorder %s824_s15, 3 }
   0xc   : > { %p887_p6 = por %p95_p3, %p44_p0  ;;  %s826_s21 = smov [#allocation5]  }
   0xd   : > { %s1060_s18 = scalar_select %p882_p4, 1, 0 }
   0xe   : > { %s1061_s19 = scalar_select %p887_p6, 1, 0 }
   0xf   : > { %p892_p8 = pnand %p565_p5, %p128_p7  ;;  %s141_s22 = sshll.u32 %s826_s21, 4  ;;  %s142_s22 = int_to_ptr.vmem [resolvable:$true] %s141_s22 }
  0x10   : > { %s900_s23 = sadd.s32 1, %s824_s15   ;;  %s31_s27 = sadd.s32 1, %s820_s14 }
  0x11   : > { %s1062_s20 = scalar_select %p892_p8, 1, 0 }
  0x12   : > { %p612_p10 = pneg %p892_p8  ;;  %s28_s25 = ssub.s32 %s824_s15, %s900_s23 }
  0x13   : > { %p910_p12 = scmp.eq.s32.totalorder %s28_s25, 0  ;;  %p38_p13 = scmp.ne.s32.totalorder %s820_s14, %s816_s13 }
  0x14   : > { %p904_p11 = pnand %p612_p10, %p1056_p1  ;;  %s683_s28 = scalar_lea.vmem %s142_s22, 128 }
  0x15   : > { %p684_p3 = scmp.ne.s32.totalorder %s142_s22, %s683_s28  ;;  %p691_p9 = scmp.lt.s32.totalorder %s142_s22, %s142_s22 }
  0x16   : > { %p674_p0 = pneg %p904_p11  ;;  %p692_p2 = scmp.lt.s32.totalorder %s683_s28, %s683_s28 }
  0x18   : > { %p686_p5 = pnand %p684_p3, %p674_p0  ;;  %p693_p10 = por %p692_p2, %p691_p9 }
  0x1a   : > { %p687_p7 = pneg %p686_p5 }
  0x1c   : > { %p694_p1 = pnand %p693_p10, %p687_p7 }
  0x1e   : > { %697 = shalt.err (!%p694_p1)
}
  0x1f   : > { %615 = dma.hbm_to_vmem [thread:$0]  (!%p904_p11), %s1053_s1, 128, %s142_s22, [#allocation6]  }
  0x20   : > { %s927_s4 = scalar_select %p910_p12, %s820_s14, %s31_s27  }
  0x21   : > { %p39_p1 = scmp.eq.s32.totalorder %s824_s15, 0  ;;  %p1065_p2 = scmp.eq.s32.totalorder %s873_s16, 1 }
  0x22   : > { %p628_p0 = scmp.lt.s32.totalorder %s824_s15, 2  ;;  %s152_s6 = sand.u32 1, %s820_s14  }
  0x23   : > { %p935_p9 = por %p1065_p2, %p38_p13  ;;  %p40_p3 = por %p39_p1, %p38_p13 }
  0x24   : > { %s568_s7 = sshll.u32 %s152_s6, 3  ;;  %s569_s8 = sshll.u32 %s824_s15, 7 }
  0x25   : > { %s1066_s5 = scalar_select %p935_p9, 1, 0 }
  0x26   : > { %s948_s11 = scalar_lea.hbm %s1052_s0, %s569_s8  ;;  %s156_s17 = scalar_lea.vmem [#allocation2], %s568_s7 }
  0x27   : > { %s163_s21 = sshll.u32 %s156_s17, 4  ;;  %p950_p11 = pnand %p628_p0, %p40_p3  ;;  %s164_s21 = int_to_ptr.vmem [resolvable:$true] %s163_s21 }
  0x28   : > { %s153_s24 = scalar_lea.sflag [#allocation3], %s152_s6  ;;  %s698_s25 = scalar_lea.hbm %s948_s11, 128 }
  0x29   : > { %p699_p12 = scmp.ne.s32.totalorder %s948_s11, %s698_s25  ;;  %p700_p13 = pneg %p950_p11 }
  0x2a   : > { %s703_s28 = scalar_lea.hbm %s1052_s0, 256  ;;  %p704_p10 = scmp.lt.s32.totalorder %s948_s11, %s1052_s0 }
  0x2b   : > { %p701_p5 = pnand %p700_p13, %p699_p12  ;;  %p705_p1 = scmp.lt.s32.totalorder %s703_s28, %s698_s25 }
  0x2d   : > { %p702_p7 = pneg %p701_p5  ;;  %p706_p2 = por %p705_p1, %p704_p10 }
  0x2f   : > { %p707_p0 = pnand %p706_p2, %p702_p7 }
  0x31   : > { %710 = shalt.err (!%p707_p0)
}
  0x32   : > { %s711_s7 = scalar_lea.vmem %s164_s21, 128  ;;  %s827_s6 = smov [#allocation2]  }
  0x33   : > { %p712_p3 = scmp.ne.s32.totalorder %s164_s21, %s711_s7  ;;  %s716_s8 = sshll.u32 %s827_s6, 4  ;;  %s717_s8 = int_to_ptr.vmem [resolvable:$false] %s716_s8 }
  0x34   : > { %s718_s9 = scalar_lea.vmem %s717_s8, 256  ;;  %p719_p12 = scmp.lt.s32.totalorder %s164_s21, %s717_s8 }
  0x35   : > { %p714_p6 = pnand %p712_p3, %p700_p13  ;;  %p720_p5 = scmp.lt.s32.totalorder %s718_s9, %s711_s7 }
  0x37   : > { %p715_p9 = pneg %p714_p6  ;;  %p721_p4 = por %p720_p5, %p719_p12 }
  0x39   : > { %p722_p8 = pnand %p721_p4, %p715_p9 }
  0x3b   : > { %725 = shalt.err (!%p722_p8)
}
  0x3c   : > { %619 = dma.hbm_to_vmem [thread:$0]  (!%p950_p11), %s948_s11, 128, %s164_s21, %s153_s24  }
  0x3d   : > { %p1068_p7 = scmp.ne.s32.totalorder %s1062_s20, 0 }
  0x3e   : > { %s971_s10 = sand.u32 (!%p1068_p7), 1, %s816_s13   ;;  %p1069_p4 = scmp.ne.s32.totalorder (!%p1068_p7), %s1060_s18, 0 }
  0x3f   : > { %172 = sbr.rel (%p1068_p7) target bundleno = 982 (0x3d6), region = 28  ;;  %s571_s17 = sshll.u32 (!%p1068_p7), %s971_s10, 3 }
  0x40   : > { %s175_s25 = scalar_lea.sflag (!%p1068_p7), [#allocation3], %s971_s10  ;;  %s178_s26 = scalar_lea.vmem (!%p1068_p7), [#allocation2], %s571_s17 }
  0x44   : > { %795 = dma.done.wait (%p1069_p4), %s175_s25, 128  }
  0x45   : > { %797 = vsyncadd (%p1069_p4), %s175_s25, 4294967168  ;;  %p1070_p6 = scmp.eq.s32.totalorder %s873_s16, 0 }
  0x47   : > { %799 = dma.done.wait (%p1070_p6), [#allocation6], 128   ;;  %p1071_p8 = pmov %p1070_p6 }
  0x48   : > { %v828_v0 = vmov 0.0   ;;  %vm829_vm0 = vmmov 0   ;;  %vm212_vm1 = vcmask 261120   ;;  %v211_v1 = vld [vmem:[#allocation5] sm:$0xff]  ;;  %v210_v2 = vld [vmem:[%s178_s26] sm:$0xff]  ;;  %vm289_vm2 = vcmask 64512  }
  0x49   : > { %801 = vsyncadd (%p1071_p8), [#allocation6], 4294967168  ;;  %588 = vmatprep.subr.mxu0 %v828_v0  ;;  %590 = vmatprep.mubr.msk.f32.mxu0 %vm829_vm0, %v828_v0  ;;  %vm392_vm3 = vcmask 7168   ;;  %s202_s18 = scalar_lea.vmem [#allocation7], %s571_s17  ;;  %s580_s20 = sshll.u32 %s873_s16, 7 }
  0x4a   : > { %593 = vmatprep.subr.mxu1 %v828_v0  ;;  %595 = vmatprep.mubr.msk.f32.mxu1 %vm829_vm0, %v828_v0  ;;  %s437_s22 = scalar_lea.hbm %s1054_s2, %s580_s20  ;;  %s439_s24 = sshll.u32 %s202_s18, 4  ;;  %s440_s24 = int_to_ptr.vmem [resolvable:$true] %s439_s24 }
  0x4b   : > { %589 = vmatpush3.xpose.msk.msra.mxu0 %vm212_vm1, %v211_v1  ;;  %594 = vmatpush3.msra.mxu1 %v211_v1  ;;  %s421_s27 = scalar_lea.sflag [#allocation4], %s971_s10  ;;  %s726_s28 = scalar_lea.vmem %s440_s24, 128 }
  0x4c   : > { %p727_p9 = scmp.ne.s32.totalorder %s440_s24, %s726_s28  ;;  %p1072_p11 = scmp.ne.s32.totalorder %s1066_s5, 0 }
  0x4d   : > { %s830_s29 = smov [#allocation7]  }
  0x4e   : > { %591 = vmatmul.mubr.msk.f32.vlgmr.msra.gmra.mxu0 %vm212_vm1, %v210_v2  ;;  %p728_p13 = pnand %p727_p9, %p1072_p11  ;;  %s730_s30 = sshll.u32 %s830_s29, 4  ;;  %s731_s30 = int_to_ptr.vmem [resolvable:$false] %s730_s30 }
  0x4f   : > { %s732_s7 = scalar_lea.vmem %s731_s30, 256  ;;  %p733_p1 = scmp.lt.s32.totalorder %s440_s24, %s731_s30 }
  0x50   : > { %p729_p10 = pneg %p728_p13  ;;  %p734_p2 = scmp.lt.s32.totalorder %s732_s7, %s726_s28 }
  0x52   : > { %p735_p0 = por %p734_p2, %p733_p1 }
  0x54   : > { %p736_p3 = pnand %p735_p0, %p729_p10 }
 0x10e   : > { %v285_v3 = vpop.f32.mrf.mxu0 }
 0x10f   : > { %v290_v4 = vsel %vm289_vm2, %v285_v3, -inf }
 0x110   : > { %291 = vmax.xlane.f32.xlu0 %v290_v4  ;;  %v592_v5 = vpop.f32.mrf.mxu0 }
 0x199   : > { %v292_v6 = vpop.xlane.xlu0 %291 }
 0x19a   : > { %v293_v7 = vsub.f32 %v285_v3, %v292_v6 }
 0x19c   : > { %v294_v8 = vmul.f32 1.442695, %v293_v7 }
 0x19e   : > { %666 = vpow2.f32 %v294_v8 }
 0x1ab   : > { %v667_v9 = vpop.eup %666 }
 0x1ac   : > { %596 = vmatmul.mubr.msk.f32.vlgmr.msra.gmra.mxu1 %vm289_vm2, %v667_v9  ;;  %v296_v10 = vsel %vm289_vm2, %v667_v9, 0.0  ;;  %v381_v11 = vmul.f32 %v667_v9, %v285_v3 }
 0x1ad   : > { %297 = vadd.xlane.f32.xlu0 %v296_v10 }
 0x1ae   : > { %v382_v12 = vsel %vm289_vm2, %v381_v11, 0.0 }
 0x1af   : > { %383 = vadd.xlane.f32.xlu1 %v382_v12 }
 0x236   : > { %v298_v13 = vpop.xlane.xlu0 %297 }
 0x237   : > { %668 = vrcp.f32 %v298_v13 }
 0x238   : > { %670 = vlog2.f32 %v298_v13  ;;  %v384_v20 = vpop.xlane.xlu1 %383 }
 0x244   : > { %v669_v14 = vpop.eup %668 }
 0x245   : > { %v671_v15 = vpop.eup %670  ;;  %v300_v16 = vmul.f32 %v669_v14, %v298_v13 }
 0x246   : > { %v379_v18 = vmul.f32 0.6931472, %v671_v15 }
 0x247   : > { %v301_v17 = vsub.f32 2.0, %v300_v16 }
 0x248   : > { %v380_v22 = vadd.f32 %v379_v18, %v292_v6 }
 0x249   : > { %v302_v19 = vmul.f32 %v669_v14, %v301_v17 }
 0x24b   : > { %v385_v21 = vmul.f32 %v384_v20, %v302_v19 }
 0x24d   : > { %v386_v23 = vsub.f32 %v380_v22, %v385_v21 }
 0x24f   : > { %v393_v24 = vsel %vm392_vm3, %v386_v23, 0.0 }
 0x250   : > { %394 = vadd.xlane.f32.xlu0 %v393_v24 }
 0x26c   : > { %v372_v25 = vpop.f32.mrf.mxu1 }
 0x26d   : > { %v376_v26 = vmul.f32 %v372_v25, %v302_v19 }
 0x26e   : > { %v597_v27 = vpop.f32.mrf.mxu1 }
 0x26f   : > { %v387_v28 = vsub.f32 %v210_v2, %v376_v26  ;;  %377 = vst.msk [vmem:[%s202_s18] sm:$0xff] %vm212_vm1, %v376_v26 }
 0x271   : > { %v388_v29 = vmul.f32 %v387_v28, %v387_v28 }
 0x273   : > { %v389_v30 = vsel %vm212_vm1, %v388_v29, 0.0 }
 0x274   : > { %390 = vadd.xlane.f32.xlu1 %v389_v30 }
 0x2d9   : > { %v395_v31 = vpop.xlane.xlu0 %394 }
 0x2da   : > { %v396_v32 = vrot.slane %v395_v31, 4 }
 0x2dc   : > { %v397_v33 = vadd.f32 %v396_v32, %v395_v31 }
 0x2de   : > { %v398_v34 = vrot.slane %v397_v33, 2 }
 0x2e0   : > { %v399_v35 = vadd.f32 %v398_v34, %v397_v33 }
 0x2e2   : > { %v400_v36 = vrot.slane %v399_v35, 1 }
 0x2e4   : > { %v401_v37 = vadd.f32 %v400_v36, %v399_v35 }
 0x2e6   : > { %598 = vpush %v401_v37 }
 0x2fd   : > { %v391_v38 = vpop.xlane.xlu1 %390 }
 0x2fe   : > { %v403_v39 = vsel %vm392_vm3, %v391_v38, 0.0 }
 0x2ff   : > { %404 = vadd.xlane.f32.xlu1 %v403_v39 }
 0x300   : > { %739 = shalt.err (!%p736_p3)
}
 0x301   : > { %s740_s6 = scalar_lea.hbm %s437_s22, 128  ;;  %s744_s17 = scalar_lea.hbm %s1054_s2, 256 }
 0x302   : > { %p741_p12 = scmp.ne.s32.totalorder %s437_s22, %s740_s6  ;;  %p745_p4 = scmp.lt.s32.totalorder %s437_s22, %s1054_s2 }
 0x303   : > { %p746_p6 = scmp.lt.s32.totalorder %s744_s17, %s740_s6 }
 0x304   : > { %p742_p5 = pnand %p741_p12, %p1072_p11 }
 0x305   : > { %p747_p8 = por %p746_p6, %p745_p4 }
 0x306   : > { %p743_p7 = pneg %p742_p5 }
 0x308   : > { %p748_p9 = pnand %p747_p8, %p743_p7 }
 0x30a   : > { %751 = shalt.err (!%p748_p9)
}
 0x30b   : > { %608 = dma.vmem_to_hbm [thread:$0]  (%p1072_p11), %s440_s24, 128, %s437_s22, %s421_s27   ;;  %v413_v47 = vlaneseq }
 0x30c   : > { %s574_s18 = sshll.u32 %s971_s10, 1  ;;  %s581_s11 = sshll.u32 %s873_s16, 5 }
 0x30d   : > { %v414_v48 = vshrl.u32 %v413_v47, 7  ;;  %s209_s21 = scalar_lea.vmem [#allocation8], %s574_s18  ;;  %s1015_s27 = scalar_lea.hbm %s1055_s3, %s581_s11 }
 0x30e   : > { %s452_s28 = sshll.u32 %s209_s21, 4  ;;  %s426_s30 = scalar_lea.sflag [#allocation9], %s971_s10  ;;  %s453_s28 = int_to_ptr.vmem [resolvable:$true] %s452_s28 }
 0x30f   : > { %vm415_vm4 = vcmp.eq.s32.totalorder %v414_v48, 0  ;;  %s752_s7 = scalar_lea.vmem %s453_s28, 32  ;;  %s831_s16 = smov [#allocation8]  }
 0x310   : > { %p753_p13 = scmp.ne.s32.totalorder %s453_s28, %s752_s7  ;;  %s756_s6 = sshll.u32 %s831_s16, 4  ;;  %s757_s6 = int_to_ptr.vmem [resolvable:$false] %s756_s6 }
 0x311   : > { %s758_s8 = scalar_lea.vmem %s757_s6, 64  ;;  %p759_p2 = scmp.lt.s32.totalorder %s453_s28, %s757_s6 }
 0x312   : > { %p754_p10 = pnand %p753_p13, %p1072_p11  ;;  %p760_p0 = scmp.lt.s32.totalorder %s758_s8, %s752_s7 }
 0x314   : > { %p755_p1 = pneg %p754_p10  ;;  %p761_p3 = por %p760_p0, %p759_p2 }
 0x316   : > { %p762_p12 = pnand %p761_p3, %p755_p1 }
 0x317   : > { %s599_s20 = spop %598 }
 0x318   : > { %v416_v49 = vstv %s599_s20 }
 0x388   : > { %v405_v40 = vpop.xlane.xlu1 %404 }
 0x389   : > { %v406_v41 = vrot.slane %v405_v40, 4 }
 0x38b   : > { %v407_v42 = vadd.f32 %v406_v41, %v405_v40 }
 0x38d   : > { %v408_v43 = vrot.slane %v407_v42, 2 }
 0x38f   : > { %v409_v44 = vadd.f32 %v408_v43, %v407_v42 }
 0x391   : > { %v410_v45 = vrot.slane %v409_v44, 1 }
 0x393   : > { %v411_v46 = vadd.f32 %v410_v45, %v409_v44 }
 0x395   : > { %600 = vpush %v411_v46 }
 0x3c6   : > { %s601_s29 = spop %600 }
 0x3c7   : > { %v417_v50 = vstv %s601_s29 }
 0x3c8   : > { %v418_v51 = vsel %vm415_vm4, %v416_v49, %v417_v50 }
 0x3c9   : > { %419 = vst [vmem:[%s209_s21] sm:$0x3] %v418_v51 }
 0x3ca   : > { %765 = shalt.err (!%p762_p12)
}
 0x3cb   : > { %s766_s9 = scalar_lea.hbm %s1015_s27, 32  ;;  %s770_s25 = scalar_lea.hbm %s1055_s3, 64 }
 0x3cc   : > { %p767_p5 = scmp.ne.s32.totalorder %s1015_s27, %s766_s9  ;;  %p771_p6 = scmp.lt.s32.totalorder %s1015_s27, %s1055_s3 }
 0x3cd   : > { %p772_p8 = scmp.lt.s32.totalorder %s770_s25, %s766_s9 }
 0x3ce   : > { %p768_p7 = pnand %p767_p5, %p1072_p11 }
 0x3cf   : > { %p773_p9 = por %p772_p8, %p771_p6 }
 0x3d0   : > { %p769_p4 = pneg %p768_p7 }
 0x3d2   : > { %p774_p13 = pnand %p773_p9, %p769_p4 }
 0x3d4   : > { %777 = shalt.err (!%p774_p13)
}
 0x3d5   : > { %609 = dma.vmem_to_hbm [thread:$0]  (%p1072_p11), %s453_s28, 32, %s1015_s27, %s426_s30  }
 0x3d6 PF: > { %s464_s20 = sand.u32 1, %s812_s12   ;;  %p1073_p10 = scmp.ne.s32.totalorder %s1061_s19, 0 }
 0x3d7   : > { %p1074_p1 = scmp.ge.s32.totalorder %s824_s15, 2  ;;  %s465_s11 = scalar_lea.sflag [#allocation4], %s464_s20 }
 0x3d9   : > { %p621_p2 = pnand %p1074_p1, %p1073_p10 }
 0x3db   : > { %p622_p0 = pneg %p621_p2 }
 0x3dd   : > { %803 = dma.done.wait (%p622_p0), %s465_s11, 128  }
 0x3de   : > { %805 = vsyncadd (%p622_p0), %s465_s11, 4294967168  ;;  %s474_s21 = scalar_lea.sflag [#allocation9], %s464_s20 }
 0x3df   : > { %807 = dma.done.wait (%p622_p0), %s474_s21, 32  }
 0x3e0   : > { %809 = vsyncadd (%p622_p0), %s474_s21, 4294967264  ;;  %p21_p11 = scmp.ge.s32.totalorder %s900_s23, 4   ;;  %s1075_s12 = smov %s816_s13 }
 0x3e1   : > { %s1076_s13 = smov %s820_s14  ;;  %s1077_s14 = smov %s927_s4 }
 0x3e2   : > { %s1078_s15 = smov %s900_s23  ;;  %23 = sbr.rel (!%p21_p11) target bundleno = 8 (0x8), region = 94 }
 0x3e7   :  { %479 = vsyncpa [#allocation3], 1 }
 0x3e8   :  { %481 = vsyncpa [#allocation3 + $0x1], 1 }
 0x3e9   :  { %482 = vsyncpa [#allocation6], 1 }
 0x3ea   :  { %483 = vsyncpa [#allocation4], 1 }
 0x3eb   :  { %485 = vsyncpa [#allocation4 + $0x1], 1 }
 0x3ec   :  { %486 = vsyncpa [#allocation9], 1 }
 0x3ed   :  { %488 = vsyncpa [#allocation9 + $0x1], 1 }

</bundles_post_ra>
